<compile_context>
chip_gen: v5e
topology: v5e:2x2
jax: 0.10.0
libtpu: 0.0.40
codegen_flags: <defaults>
</compile_context>

<pallas_src>
import functools
import math

import jax
import jax.numpy as jnp
from jax.experimental import pallas as pl
from jax.experimental.pallas import tpu as pltpu


# ----------------------------------------------------------------------------
# Fused forward kernel: one grid step == one batch element.
# ----------------------------------------------------------------------------
def _value_net_kernel(s_ref, p_ref, col_ref,
                      w_emb_ref, b_emb_ref,
                      w_qkv_ref, b_qkv_ref,
                      w_tkv_ref, b_tkv_ref,
                      w_out_ref, b_out_ref,
                      o_ref):
    f32 = jnp.float32
    bf16 = jnp.bfloat16

    n = s_ref.shape[1]          # number of agents
    tn = p_ref.shape[1]         # T * N flattened past tokens
    h = w_emb_ref.shape[1]      # hidden size (lane-dense)
    scale = 1.0 / math.sqrt(h)

    w_emb = w_emb_ref[...]      # (D, H)  bf16, VMEM-resident across grid steps
    b_emb = b_emb_ref[...]      # (1, H)  f32

    x = s_ref[0].astype(bf16)   # (N, D)
    px = p_ref[0].astype(bf16)  # (TN, D)

    # Shared feature embedding (current + past), ReLU.  bf16 in, f32 accumulate.
    cur = jnp.maximum(jnp.dot(x, w_emb, preferred_element_type=f32) + b_emb, 0.0)    # (N, H)
    pe = jnp.maximum(jnp.dot(px, w_emb, preferred_element_type=f32) + b_emb, 0.0)    # (TN, H)

    # Fused Q | K | V | tq projection on the current embedding: one (H, 4H) matmul.
    proj = jnp.dot(cur.astype(bf16), w_qkv_ref[...], preferred_element_type=f32) + b_qkv_ref[...]  # (N, 4H)
    q = proj[:, 0:h]
    k = proj[:, h:2 * h]
    v = proj[:, 2 * h:3 * h]
    tq = proj[:, 3 * h:4 * h]

    # Fused tK | tV projection on the past embedding: one (H, 2H) matmul.
    tkv = jnp.dot(pe.astype(bf16), w_tkv_ref[...], preferred_element_type=f32) + b_tkv_ref[...]    # (TN, 2H)
    tk = tkv[:, 0:h]
    tv = tkv[:, h:2 * h]

    # ---- spatial attention over agents (current timestep) ----
    s = jax.lax.dot_general(q.astype(bf16), k.astype(bf16),
                            (((1,), (1,)), ((), ())),
                            preferred_element_type=f32) * scale                      # (N, N)
    s = s - jnp.max(s, axis=-1, keepdims=True)
    ps = jnp.exp(s)
    ps = ps * pl.reciprocal(jnp.sum(ps, axis=-1, keepdims=True), approx=True)
    spatial = jnp.dot(ps.astype(bf16), v.astype(bf16), preferred_element_type=f32)   # (N, H)

    # ---- temporal attention over past steps, batched over all N agents ----
    # Past tokens stay in native (T*N) order; agent n attends only to columns
    # whose agent id (col_ref) equals n -> masked attention, two MXU matmuls.
    st = jax.lax.dot_general(tq.astype(bf16), tk.astype(bf16),
                             (((1,), (1,)), ((), ())),
                             preferred_element_type=f32) * scale                     # (N, TN)
    row_agent = jax.lax.broadcasted_iota(jnp.int32, (n, tn), 0)                      # (N, TN)
    mask = col_ref[...] == row_agent                                                 # (1,TN)==(N,TN)
    st = jnp.where(mask, st, -1e30)
    st = st - jnp.max(st, axis=-1, keepdims=True)
    pt = jnp.exp(st)
    pt = pt * pl.reciprocal(jnp.sum(pt, axis=-1, keepdims=True), approx=True)
    temporal = jnp.dot(pt.astype(bf16), tv.astype(bf16), preferred_element_type=f32)  # (N, H)

    # ---- residual + agent pooling + nn.Linear head (lane-dense, zero-padded) ----
    feat = spatial + temporal                                                        # (N, H)
    pooled = jnp.mean(feat, axis=0, keepdims=True)                                   # (1, H)
    y = jnp.dot(pooled.astype(bf16), w_out_ref[...], preferred_element_type=f32) + b_out_ref[...]
    o_ref[0] = y.astype(o_ref.dtype)                                                 # (1, OUT_PAD)


# ----------------------------------------------------------------------------
# Wrapper: single pallas_call, grid over batch, weights VMEM-resident.
# ----------------------------------------------------------------------------
def value_network_forward(params, state, past_states, *, out_dim):
    B, N, D = state.shape
    T = past_states.shape[1]
    TN = T * N
    H = params["w_emb"].shape[1]
    OUT_PAD = params["w_out"].shape[1]

    # Contiguous collapse (no data movement), keeps past in native T-major layout.
    past_flat = past_states.reshape(B, TN, D)
    # Agent id of each flattened past token (constant; folded at trace time).
    col_ids = jnp.tile(jnp.arange(N, dtype=jnp.int32), T).reshape(1, TN)

    const2 = lambda i: (0, 0)
    out = pl.pallas_call(
        _value_net_kernel,
        out_shape=jax.ShapeDtypeStruct((B, 1, OUT_PAD), jnp.float32),
        grid=(B,),
        in_specs=[
            pl.BlockSpec((1, N, D), lambda i: (i, 0, 0)),    # state, per-batch block
            pl.BlockSpec((1, TN, D), lambda i: (i, 0, 0)),   # past (flattened), per-batch
            pl.BlockSpec((1, TN), const2),                   # token->agent id map
            pl.BlockSpec((D, H), const2),                    # w_emb      (bf16)
            pl.BlockSpec((1, H), const2),                    # b_emb
            pl.BlockSpec((H, 4 * H), const2),                # w_q|k|v|tq (bf16)
            pl.BlockSpec((1, 4 * H), const2),                # b_q|k|v|tq
            pl.BlockSpec((H, 2 * H), const2),                # w_tk|tv    (bf16)
            pl.BlockSpec((1, 2 * H), const2),                # b_tk|tv
            pl.BlockSpec((H, OUT_PAD), const2),              # head weight (padded)
            pl.BlockSpec((1, OUT_PAD), const2),              # head bias   (padded)
        ],
        out_specs=pl.BlockSpec((1, 1, OUT_PAD), lambda i: (i, 0, 0)),
        compiler_params=pltpu.CompilerParams(
            dimension_semantics=("parallel",),               # shard batch over v7x TCs
        ),
    )(state, past_flat, col_ids,
      params["w_emb"], params["b_emb"],
      params["w_qkv"], params["b_qkv"],
      params["w_tkv"], params["b_tkv"],
      params["w_out"], params["b_out"])

    return out.reshape(B, OUT_PAD)[:, :out_dim]


# ----------------------------------------------------------------------------
# Parameters (deterministic synthetic init; projections pre-concatenated,
# head zero-padded to a lane-dense width, matmul weights stored in bf16).
# ----------------------------------------------------------------------------
def init_params(key, d, h, out_dim):
    out_pad = max(128, ((out_dim + 127) // 128) * 128)
    ks = jax.random.split(key, 8)

    def glorot(k, shape):
        lim = math.sqrt(6.0 / (shape[0] + shape[1]))
        return jax.random.uniform(k, shape, jnp.float32, -lim, lim)

    w_emb = glorot(ks[0], (d, h))
    w_q, w_k, w_v, w_tq = (glorot(ks[i], (h, h)) for i in range(1, 5))
    w_tk, w_tv = glorot(ks[5], (h, h)), glorot(ks[6], (h, h))
    w_out = glorot(ks[7], (h, out_dim))
    w_out_pad = jnp.zeros((h, out_pad), jnp.float32).at[:, :out_dim].set(w_out)

    return {
        "w_emb": w_emb.astype(jnp.bfloat16),
        "b_emb": jnp.zeros((1, h), jnp.float32),
        "w_qkv": jnp.concatenate([w_q, w_k, w_v, w_tq], axis=1).astype(jnp.bfloat16),  # (H, 4H)
        "b_qkv": jnp.zeros((1, 4 * h), jnp.float32),
        "w_tkv": jnp.concatenate([w_tk, w_tv], axis=1).astype(jnp.bfloat16),           # (H, 2H)
        "b_tkv": jnp.zeros((1, 2 * h), jnp.float32),
        "w_out": w_out_pad.astype(jnp.bfloat16),                                       # (H, OUT_PAD)
        "b_out": jnp.zeros((1, out_pad), jnp.float32),
    }


# ----------------------------------------------------------------------------
# Pure-JAX f32 reference (same math) for a numerical sanity check.
# ----------------------------------------------------------------------------
def value_network_reference(params, state, past_states, *, out_dim):
    f32 = jnp.float32
    B, N, D = state.shape
    T = past_states.shape[1]
    H = params["w_emb"].shape[1]
    scale = 1.0 / math.sqrt(H)

    we, be = params["w_emb"].astype(f32), params["b_emb"]
    wqkv, bqkv = params["w_qkv"].astype(f32), params["b_qkv"]
    wtkv, btkv = params["w_tkv"].astype(f32), params["b_tkv"]
    wout, bout = params["w_out"].astype(f32), params["b_out"]

    past_flat = past_states.reshape(B, T * N, D)
    cur = jax.nn.relu(jnp.einsum("bnd,dh->bnh", state, we) + be)
    pe = jax.nn.relu(jnp.einsum("bmd,dh->bmh", past_flat, we) + be)

    proj = jnp.einsum("bnh,hk->bnk", cur, wqkv) + bqkv
    q, k, v, tq = jnp.split(proj, 4, axis=-1)
    tkv = jnp.einsum("bmh,hk->bmk", pe, wtkv) + btkv
    tk, tv = jnp.split(tkv, 2, axis=-1)

    s = jnp.einsum("bnh,bmh->bnm", q, k) * scale
    spatial = jnp.einsum("bnm,bmh->bnh", jax.nn.softmax(s, axis=-1), v)

    st = jnp.einsum("bnh,bmh->bnm", tq, tk) * scale
    col = jnp.tile(jnp.arange(N), T)[None, None, :]
    row = jnp.arange(N)[None, :, None]
    st = jnp.where(col == row, st, -1e30)
    temporal = jnp.einsum("bnm,bmh->bnh", jax.nn.softmax(st, axis=-1), tv)

    pooled = (spatial + temporal).mean(axis=1)
    y = pooled @ wout + bout
    return y[:, :out_dim]


if __name__ == "__main__":
    # 13 = CrowdNav rotated-state length; H chosen lane-dense (128).
    B, N, T, D, H, OUT = 2, 5, 8, 13, 128, 1
    key = jax.random.PRNGKey(0)
    k1, k2, k3 = jax.random.split(key, 3)
    state = jax.random.normal(k1, (B, N, D), jnp.float32)
    past_states = jax.random.normal(k2, (B, T, N, D), jnp.float32)
    params = init_params(k3, D, H, OUT)

    fwd = jax.jit(functools.partial(value_network_forward, out_dim=OUT))
    value = fwd(params, state, past_states)
    jax.block_until_ready(value)

    assert value.shape == (B, OUT)
    assert bool(jnp.all(jnp.isfinite(value)))

    ref = value_network_reference(params, state, past_states, out_dim=OUT)
    max_err = float(jnp.max(jnp.abs(value - ref)))
    assert max_err < 1e-1, f"kernel vs reference mismatch: {max_err}"
    print("KERNEL_OK")
</pallas_src>

<mosaic_0001>
module attributes {stable_mosaic.version = 11 : i64} {
  func.func @_value_net_kernel(%arg0: i32, %arg1: memref<1x5x13xf32, #tpu.memory_space<vmem>>, %arg2: memref<1x40x13xf32, #tpu.memory_space<vmem>>, %arg3: memref<1x40xi32, #tpu.memory_space<vmem>>, %arg4: memref<13x128xbf16, #tpu.memory_space<vmem>>, %arg5: memref<1x128xf32, #tpu.memory_space<vmem>>, %arg6: memref<128x512xbf16, #tpu.memory_space<vmem>>, %arg7: memref<1x512xf32, #tpu.memory_space<vmem>>, %arg8: memref<128x256xbf16, #tpu.memory_space<vmem>>, %arg9: memref<1x256xf32, #tpu.memory_space<vmem>>, %arg10: memref<128x128xbf16, #tpu.memory_space<vmem>>, %arg11: memref<1x128xf32, #tpu.memory_space<vmem>>, %arg12: memref<1x1x128xf32, #tpu.memory_space<vmem>>) attributes {dimension_semantics = [#tpu.dimension_semantics<parallel>], iteration_bounds = array<i64: 2>, scalar_prefetch = 0 : i64, scratch_operands = 0 : i64, tpu.core_type = #tpu.core_type<tc>, window_params = [{transform_indices = @transform_0, window_bounds = array<i64: 1, 5, 13>}, {transform_indices = @transform_1, window_bounds = array<i64: 1, 40, 13>}, {pipeline_mode = #tpu.pipeline_mode<synchronous>, transform_indices = @transform_2, window_bounds = array<i64: 1, 40>}, {pipeline_mode = #tpu.pipeline_mode<synchronous>, transform_indices = @transform_3, window_bounds = array<i64: 13, 128>}, {pipeline_mode = #tpu.pipeline_mode<synchronous>, transform_indices = @transform_4, window_bounds = array<i64: 1, 128>}, {pipeline_mode = #tpu.pipeline_mode<synchronous>, transform_indices = @transform_5, window_bounds = array<i64: 128, 512>}, {pipeline_mode = #tpu.pipeline_mode<synchronous>, transform_indices = @transform_6, window_bounds = array<i64: 1, 512>}, {pipeline_mode = #tpu.pipeline_mode<synchronous>, transform_indices = @transform_7, window_bounds = array<i64: 128, 256>}, {pipeline_mode = #tpu.pipeline_mode<synchronous>, transform_indices = @transform_8, window_bounds = array<i64: 1, 256>}, {pipeline_mode = #tpu.pipeline_mode<synchronous>, transform_indices = @transform_9, window_bounds = array<i64: 128, 128>}, {pipeline_mode = #tpu.pipeline_mode<synchronous>, transform_indices = @transform_10, window_bounds = array<i64: 1, 128>}, {transform_indices = @transform_11, window_bounds = array<i64: 1, 1, 128>}]} {
    %c0 = arith.constant 0 : index
    %c0_0 = arith.constant 0 : index
    %0 = vector.load %arg4[%c0, %c0_0] : memref<13x128xbf16, #tpu.memory_space<vmem>>, vector<13x128xbf16>
    %c0_1 = arith.constant 0 : index
    %c0_2 = arith.constant 0 : index
    %1 = vector.load %arg5[%c0_1, %c0_2] : memref<1x128xf32, #tpu.memory_space<vmem>>, vector<1x128xf32>
    %c0_3 = arith.constant 0 : index
    %c0_4 = arith.constant 0 : index
    %c0_5 = arith.constant 0 : index
    %2 = vector.load %arg1[%c0_3, %c0_4, %c0_5] : memref<1x5x13xf32, #tpu.memory_space<vmem>>, vector<1x5x13xf32>
    %3 = vector.shape_cast %2 : vector<1x5x13xf32> to vector<5x13xf32>
    %4 = arith.truncf %3 : vector<5x13xf32> to vector<5x13xbf16>
    %c0_6 = arith.constant 0 : index
    %c0_7 = arith.constant 0 : index
    %c0_8 = arith.constant 0 : index
    %5 = vector.load %arg2[%c0_6, %c0_7, %c0_8] : memref<1x40x13xf32, #tpu.memory_space<vmem>>, vector<1x40x13xf32>
    %6 = vector.shape_cast %5 : vector<1x40x13xf32> to vector<40x13xf32>
    %7 = arith.truncf %6 : vector<40x13xf32> to vector<40x13xbf16>
    %cst = arith.constant dense<0.000000e+00> : vector<5x128xf32>
    %8 = tpu.matmul %4, %0, %cst {dimension_numbers = #tpu.dot_dimension_numbers<[1], [0], [0], [1], [0, 0, 1, 1], [], []>} : vector<5x13xbf16>, vector<13x128xbf16>, vector<5x128xf32> -> vector<5x128xf32>
    %9 = vector.broadcast %1 : vector<1x128xf32> to vector<5x128xf32>
    %10 = arith.addf %8, %9 : vector<5x128xf32>
    %cst_9 = arith.constant 0.000000e+00 : f32
    %11 = vector.broadcast %cst_9 : f32 to vector<5x128xf32>
    %12 = arith.maximumf %10, %11 : vector<5x128xf32>
    %cst_10 = arith.constant dense<0.000000e+00> : vector<40x128xf32>
    %13 = tpu.matmul %7, %0, %cst_10 {dimension_numbers = #tpu.dot_dimension_numbers<[1], [0], [0], [1], [0, 0, 1, 1], [], []>} : vector<40x13xbf16>, vector<13x128xbf16>, vector<40x128xf32> -> vector<40x128xf32>
    %14 = vector.broadcast %1 : vector<1x128xf32> to vector<40x128xf32>
    %15 = arith.addf %13, %14 : vector<40x128xf32>
    %cst_11 = arith.constant 0.000000e+00 : f32
    %16 = vector.broadcast %cst_11 : f32 to vector<40x128xf32>
    %17 = arith.maximumf %15, %16 : vector<40x128xf32>
    %18 = arith.truncf %12 : vector<5x128xf32> to vector<5x128xbf16>
    %c0_12 = arith.constant 0 : index
    %c0_13 = arith.constant 0 : index
    %19 = vector.load %arg6[%c0_12, %c0_13] : memref<128x512xbf16, #tpu.memory_space<vmem>>, vector<128x512xbf16>
    %cst_14 = arith.constant dense<0.000000e+00> : vector<5x512xf32>
    %20 = tpu.matmul %18, %19, %cst_14 {dimension_numbers = #tpu.dot_dimension_numbers<[1], [0], [0], [1], [0, 0, 1, 1], [], []>} : vector<5x128xbf16>, vector<128x512xbf16>, vector<5x512xf32> -> vector<5x512xf32>
    %c0_15 = arith.constant 0 : index
    %c0_16 = arith.constant 0 : index
    %21 = vector.load %arg7[%c0_15, %c0_16] : memref<1x512xf32, #tpu.memory_space<vmem>>, vector<1x512xf32>
    %22 = vector.broadcast %21 : vector<1x512xf32> to vector<5x512xf32>
    %23 = arith.addf %20, %22 : vector<5x512xf32>
    %24 = vector.extract_strided_slice %23 {offsets = [0, 0], sizes = [5, 128], strides = [1, 1]} : vector<5x512xf32> to vector<5x128xf32>
    %25 = vector.extract_strided_slice %23 {offsets = [0, 128], sizes = [5, 128], strides = [1, 1]} : vector<5x512xf32> to vector<5x128xf32>
    %26 = vector.extract_strided_slice %23 {offsets = [0, 256], sizes = [5, 128], strides = [1, 1]} : vector<5x512xf32> to vector<5x128xf32>
    %27 = vector.extract_strided_slice %23 {offsets = [0, 384], sizes = [5, 128], strides = [1, 1]} : vector<5x512xf32> to vector<5x128xf32>
    %28 = arith.truncf %17 : vector<40x128xf32> to vector<40x128xbf16>
    %c0_17 = arith.constant 0 : index
    %c0_18 = arith.constant 0 : index
    %29 = vector.load %arg8[%c0_17, %c0_18] : memref<128x256xbf16, #tpu.memory_space<vmem>>, vector<128x256xbf16>
    %cst_19 = arith.constant dense<0.000000e+00> : vector<40x256xf32>
    %30 = tpu.matmul %28, %29, %cst_19 {dimension_numbers = #tpu.dot_dimension_numbers<[1], [0], [0], [1], [0, 0, 1, 1], [], []>} : vector<40x128xbf16>, vector<128x256xbf16>, vector<40x256xf32> -> vector<40x256xf32>
    %c0_20 = arith.constant 0 : index
    %c0_21 = arith.constant 0 : index
    %31 = vector.load %arg9[%c0_20, %c0_21] : memref<1x256xf32, #tpu.memory_space<vmem>>, vector<1x256xf32>
    %32 = vector.broadcast %31 : vector<1x256xf32> to vector<40x256xf32>
    %33 = arith.addf %30, %32 : vector<40x256xf32>
    %34 = vector.extract_strided_slice %33 {offsets = [0, 0], sizes = [40, 128], strides = [1, 1]} : vector<40x256xf32> to vector<40x128xf32>
    %35 = vector.extract_strided_slice %33 {offsets = [0, 128], sizes = [40, 128], strides = [1, 1]} : vector<40x256xf32> to vector<40x128xf32>
    %36 = arith.truncf %24 : vector<5x128xf32> to vector<5x128xbf16>
    %37 = arith.truncf %25 : vector<5x128xf32> to vector<5x128xbf16>
    %cst_22 = arith.constant dense<0.000000e+00> : vector<5x5xf32>
    %38 = tpu.matmul %36, %37, %cst_22 {dimension_numbers = #tpu.dot_dimension_numbers<[1], [1], [0], [0], [0, 0, 1, 0], [], []>} : vector<5x128xbf16>, vector<5x128xbf16>, vector<5x5xf32> -> vector<5x5xf32>
    %cst_23 = arith.constant 0.0883883461 : f32
    %39 = vector.broadcast %cst_23 : f32 to vector<5x5xf32>
    %40 = arith.mulf %38, %39 : vector<5x5xf32>
    %cst_24 = arith.constant dense<0xFF800000> : vector<5xf32>
    %41 = vector.multi_reduction <maximumf>, %40, %cst_24 [1] : vector<5x5xf32> to vector<5xf32>
    %42 = vector.shape_cast %41 : vector<5xf32> to vector<5x1xf32>
    %43 = vector.broadcast %42 : vector<5x1xf32> to vector<5x5xf32>
    %44 = arith.subf %40, %43 : vector<5x5xf32>
    %45 = math.exp %44 : vector<5x5xf32>
    %cst_25 = arith.constant dense<0.000000e+00> : vector<5xf32>
    %46 = vector.multi_reduction <add>, %45, %cst_25 [1] : vector<5x5xf32> to vector<5xf32>
    %47 = vector.shape_cast %46 : vector<5xf32> to vector<5x1xf32>
    %48 = tpu.reciprocal %47 {approx = true} : vector<5x1xf32> -> vector<5x1xf32>
    %49 = vector.broadcast %48 : vector<5x1xf32> to vector<5x5xf32>
    %50 = arith.mulf %45, %49 : vector<5x5xf32>
    %51 = arith.truncf %50 : vector<5x5xf32> to vector<5x5xbf16>
    %52 = arith.truncf %26 : vector<5x128xf32> to vector<5x128xbf16>
    %cst_26 = arith.constant dense<0.000000e+00> : vector<5x128xf32>
    %53 = tpu.matmul %51, %52, %cst_26 {dimension_numbers = #tpu.dot_dimension_numbers<[1], [0], [0], [1], [0, 0, 1, 1], [], []>} : vector<5x5xbf16>, vector<5x128xbf16>, vector<5x128xf32> -> vector<5x128xf32>
    %54 = arith.truncf %27 : vector<5x128xf32> to vector<5x128xbf16>
    %55 = arith.truncf %34 : vector<40x128xf32> to vector<40x128xbf16>
    %cst_27 = arith.constant dense<0.000000e+00> : vector<5x40xf32>
    %56 = tpu.matmul %54, %55, %cst_27 {dimension_numbers = #tpu.dot_dimension_numbers<[1], [1], [0], [0], [0, 0, 1, 0], [], []>} : vector<5x128xbf16>, vector<40x128xbf16>, vector<5x40xf32> -> vector<5x40xf32>
    %cst_28 = arith.constant 0.0883883461 : f32
    %57 = vector.broadcast %cst_28 : f32 to vector<5x40xf32>
    %58 = arith.mulf %56, %57 : vector<5x40xf32>
    %59 = tpu.iota {dimensions = array<i32: 0>} : vector<5x40xi32>
    %c0_29 = arith.constant 0 : index
    %c0_30 = arith.constant 0 : index
    %60 = vector.load %arg3[%c0_29, %c0_30] : memref<1x40xi32, #tpu.memory_space<vmem>>, vector<1x40xi32>
    %61 = vector.broadcast %60 : vector<1x40xi32> to vector<5x40xi32>
    %62 = arith.cmpi eq, %61, %59 : vector<5x40xi32>
    %cst_31 = arith.constant -1.000000e+30 : f32
    %63 = vector.broadcast %cst_31 : f32 to vector<5x40xf32>
    %64 = arith.select %62, %58, %63 : vector<5x40xi1>, vector<5x40xf32>
    %cst_32 = arith.constant dense<0xFF800000> : vector<5xf32>
    %65 = vector.multi_reduction <maximumf>, %64, %cst_32 [1] : vector<5x40xf32> to vector<5xf32>
    %66 = vector.shape_cast %65 : vector<5xf32> to vector<5x1xf32>
    %67 = vector.broadcast %66 : vector<5x1xf32> to vector<5x40xf32>
    %68 = arith.subf %64, %67 : vector<5x40xf32>
    %69 = math.exp %68 : vector<5x40xf32>
    %cst_33 = arith.constant dense<0.000000e+00> : vector<5xf32>
    %70 = vector.multi_reduction <add>, %69, %cst_33 [1] : vector<5x40xf32> to vector<5xf32>
    %71 = vector.shape_cast %70 : vector<5xf32> to vector<5x1xf32>
    %72 = tpu.reciprocal %71 {approx = true} : vector<5x1xf32> -> vector<5x1xf32>
    %73 = vector.broadcast %72 : vector<5x1xf32> to vector<5x40xf32>
    %74 = arith.mulf %69, %73 : vector<5x40xf32>
    %75 = arith.truncf %74 : vector<5x40xf32> to vector<5x40xbf16>
    %76 = arith.truncf %35 : vector<40x128xf32> to vector<40x128xbf16>
    %cst_34 = arith.constant dense<0.000000e+00> : vector<5x128xf32>
    %77 = tpu.matmul %75, %76, %cst_34 {dimension_numbers = #tpu.dot_dimension_numbers<[1], [0], [0], [1], [0, 0, 1, 1], [], []>} : vector<5x40xbf16>, vector<40x128xbf16>, vector<5x128xf32> -> vector<5x128xf32>
    %78 = arith.addf %53, %77 : vector<5x128xf32>
    %cst_35 = arith.constant dense<0.000000e+00> : vector<128xf32>
    %79 = vector.multi_reduction <add>, %78, %cst_35 [0] : vector<5x128xf32> to vector<128xf32>
    %80 = vector.shape_cast %79 : vector<128xf32> to vector<1x128xf32>
    %cst_36 = arith.constant 5.000000e+00 : f32
    %81 = vector.broadcast %cst_36 : f32 to vector<1x128xf32>
    %82 = arith.divf %80, %81 : vector<1x128xf32>
    %83 = arith.truncf %82 : vector<1x128xf32> to vector<1x128xbf16>
    %c0_37 = arith.constant 0 : index
    %c0_38 = arith.constant 0 : index
    %84 = vector.load %arg10[%c0_37, %c0_38] : memref<128x128xbf16, #tpu.memory_space<vmem>>, vector<128x128xbf16>
    %cst_39 = arith.constant dense<0.000000e+00> : vector<1x128xf32>
    %85 = tpu.matmul %83, %84, %cst_39 {dimension_numbers = #tpu.dot_dimension_numbers<[1], [0], [0], [1], [0, 0, 1, 1], [], []>} : vector<1x128xbf16>, vector<128x128xbf16>, vector<1x128xf32> -> vector<1x128xf32>
    %c0_40 = arith.constant 0 : index
    %c0_41 = arith.constant 0 : index
    %86 = vector.load %arg11[%c0_40, %c0_41] : memref<1x128xf32, #tpu.memory_space<vmem>>, vector<1x128xf32>
    %87 = arith.addf %85, %86 : vector<1x128xf32>
    %c0_42 = arith.constant 0 : index
    %c0_43 = arith.constant 0 : index
    %c0_44 = arith.constant 0 : index
    %88 = vector.load %arg12[%c0_42, %c0_43, %c0_44] : memref<1x1x128xf32, #tpu.memory_space<vmem>>, vector<1x1x128xf32>
    %89 = vector.shape_cast %88 : vector<1x1x128xf32> to vector<1x128xf32>
    %90 = vector.shape_cast %87 : vector<1x128xf32> to vector<1x1x128xf32>
    tpu.vector_store %arg12[%c0_42, %c0_43, %c0_44], %90 {strides = array<i32>} : memref<1x1x128xf32, #tpu.memory_space<vmem>>, vector<1x1x128xf32>,
    return
  }
  func.func @transform_0(%arg0: i32) -> (i32, i32, i32) {
    %c0_i32 = arith.constant 0 : i32
    %c0_i32_0 = arith.constant 0 : i32
    %c0_i32_1 = arith.constant 0 : i32
    return %arg0, %c0_i32, %c0_i32_0 : i32, i32, i32
  }
  func.func @transform_1(%arg0: i32) -> (i32, i32, i32) {
    %c0_i32 = arith.constant 0 : i32
    %c0_i32_0 = arith.constant 0 : i32
    %c0_i32_1 = arith.constant 0 : i32
    return %arg0, %c0_i32, %c0_i32_0 : i32, i32, i32
  }
  func.func @transform_2(%arg0: i32) -> (i32, i32) {
    %c0_i32 = arith.constant 0 : i32
    %c0_i32_0 = arith.constant 0 : i32
    %c0_i32_1 = arith.constant 0 : i32
    return %c0_i32, %c0_i32_0 : i32, i32
  }
  func.func @transform_3(%arg0: i32) -> (i32, i32) {
    %c0_i32 = arith.constant 0 : i32
    %c0_i32_0 = arith.constant 0 : i32
    %c0_i32_1 = arith.constant 0 : i32
    return %c0_i32, %c0_i32_0 : i32, i32
  }
  func.func @transform_4(%arg0: i32) -> (i32, i32) {
    %c0_i32 = arith.constant 0 : i32
    %c0_i32_0 = arith.constant 0 : i32
    %c0_i32_1 = arith.constant 0 : i32
    return %c0_i32, %c0_i32_0 : i32, i32
  }
  func.func @transform_5(%arg0: i32) -> (i32, i32) {
    %c0_i32 = arith.constant 0 : i32
    %c0_i32_0 = arith.constant 0 : i32
    %c0_i32_1 = arith.constant 0 : i32
    return %c0_i32, %c0_i32_0 : i32, i32
  }
  func.func @transform_6(%arg0: i32) -> (i32, i32) {
    %c0_i32 = arith.constant 0 : i32
    %c0_i32_0 = arith.constant 0 : i32
    %c0_i32_1 = arith.constant 0 : i32
    return %c0_i32, %c0_i32_0 : i32, i32
  }
  func.func @transform_7(%arg0: i32) -> (i32, i32) {
    %c0_i32 = arith.constant 0 : i32
    %c0_i32_0 = arith.constant 0 : i32
    %c0_i32_1 = arith.constant 0 : i32
    return %c0_i32, %c0_i32_0 : i32, i32
  }
  func.func @transform_8(%arg0: i32) -> (i32, i32) {
    %c0_i32 = arith.constant 0 : i32
    %c0_i32_0 = arith.constant 0 : i32
    %c0_i32_1 = arith.constant 0 : i32
    return %c0_i32, %c0_i32_0 : i32, i32
  }
  func.func @transform_9(%arg0: i32) -> (i32, i32) {
    %c0_i32 = arith.constant 0 : i32
    %c0_i32_0 = arith.constant 0 : i32
    %c0_i32_1 = arith.constant 0 : i32
    return %c0_i32, %c0_i32_0 : i32, i32
  }
  func.func @transform_10(%arg0: i32) -> (i32, i32) {
    %c0_i32 = arith.constant 0 : i32
    %c0_i32_0 = arith.constant 0 : i32
    %c0_i32_1 = arith.constant 0 : i32
    return %c0_i32, %c0_i32_0 : i32, i32
  }
  func.func @transform_11(%arg0: i32) -> (i32, i32, i32) {
    %c0_i32 = arith.constant 0 : i32
    %c0_i32_0 = arith.constant 0 : i32
    %c0_i32_1 = arith.constant 0 : i32
    return %arg0, %c0_i32, %c0_i32_0 : i32, i32, i32
  }
}

</mosaic_0001>

<bundles_post_ra>
// kernel: tile.9
= control target key start
LH: loop header
LB: loop body
LE: loop exit
PB: predicated region body
PF: predicated region fallthrough
CT: control target
= control target key end

     0   :  { %s67_s10 = smov 35   ;;  %s68_s11 = smov 25   ;;  %vm3_vm0 = vcmask 39936   ;;  %vm9_vm1 = vcmask 326936   ;;  %vm15_vm2 = vcmask 285936   ;;  %vm21_vm3 = vcmask 244936   ;;  %s111_s0 = inlined_call_operand.vmem [shape: s32[8,5], index: 0, kind: input, shape index: {}]   ;;  %s112_s1 = inlined_call_operand.vmem [shape: s32[1,40], index: 1, kind: output, shape index: {}]  }
   0x1   :  { %v53_v0 = vld [vmem:[%s111_s0 + $0x7] sm:$0x1]   ;;  %v55_v1 = vld [vmem:[%s111_s0 + $0x5] sm:$0x1]   ;;  %v57_v2 = vld [vmem:[%s111_s0 + $0x3] sm:$0x1]  }
   0x2   :  { %7 = vrot.lane.b32.xlu0 %v53_v0, %s67_s10  ;;  %19 = vrot.lane.b32.xlu1 %v55_v1, %s68_s11  ;;  %s69_s14 = smov 15   ;;  %v54_v3 = vld [vmem:[%s111_s0 + $0x6] sm:$0x1]   ;;  %v56_v4 = vld [vmem:[%s111_s0 + $0x4] sm:$0x1]   ;;  %s70_s21 = smov 30  }
   0x3   :  { %31 = vrot.lane.b32.xlu2 %v57_v2, %s69_s14  ;;  %v58_v5 = vld [vmem:[%s111_s0 + $0x2] sm:$0x1]   ;;  %s71_s22 = smov 20   ;;  %s72_s23 = smov 10   ;;  %v59_v6 = vld [vmem:[%s111_s0 + $0x1] sm:$0x1]  }
   0x4   :  { %s73_s26 = smov 5   ;;  %v2_v7 = vld [vmem:[%s111_s0] sm:$0x1]   ;;  %vm27_vm4 = vcmask 203936   ;;  %vm33_vm5 = vcmask 162936   ;;  %vm39_vm6 = vcmask 121936  }
   0x5   :  { %4 = vst.msk [vmem:[#allocation0] sm:$0x1] %vm3_vm0, %v2_v7   ;;  %vm45_vm7 = vcmask 80936  }
   0xa   :  { %13 = vrot.lane.b32.xlu0 %v54_v3, %s70_s21  ;;  %25 = vrot.lane.b32.xlu1 %v56_v4, %s71_s22 }
   0xb   :  { %37 = vrot.lane.b32.xlu2 %v58_v5, %s72_s23 }
  0x12   :  { %43 = vrot.lane.b32.xlu0 %v59_v6, %s73_s26 }
  0x5d   :  { %v32_v8 = vpop.permute.xlu2 %31  }
  0x65   :  { %v38_v9 = vpop.permute.xlu2 %37  }
  0x74   :  { %v8_v10 = vpop.permute.xlu0 %7   ;;  %v20_v11 = vpop.permute.xlu1 %19  }
  0x75   :  { %10 = vst.msk [vmem:[#allocation0] sm:$0x1] %vm9_vm1, %v8_v10  }
  0x7c   :  { %v14_v12 = vpop.permute.xlu0 %13   ;;  %v26_v13 = vpop.permute.xlu1 %25  }
  0x7d   :  { %16 = vst.msk [vmem:[#allocation0] sm:$0x1] %vm15_vm2, %v14_v12  }
  0x7e   :  { %22 = vst.msk [vmem:[#allocation0] sm:$0x1] %vm21_vm3, %v20_v11  }
  0x7f   :  { %28 = vst.msk [vmem:[#allocation0] sm:$0x1] %vm27_vm4, %v26_v13  }
  0x80   :  { %34 = vst.msk [vmem:[#allocation0] sm:$0x1] %vm33_vm5, %v32_v8  }
  0x81   :  { %40 = vst.msk [vmem:[#allocation0] sm:$0x1] %vm39_vm6, %v38_v9  }
  0x84   :  { %v44_v14 = vpop.permute.xlu0 %43  }
  0x85   :  { %46 = vst.msk [vmem:[#allocation0] sm:$0x1] %vm45_vm7, %v44_v14  }
  0x8c   :  { %v49_v15 = vld [vmem:[#allocation0] sm:$0x1] }
  0x8d   :  { %52 = vst [vmem:[%s112_s1] sm:$0x1] %v49_v15 }

// kernel: value_network_forward.1
= control target key start
LH: loop header
LB: loop body
LE: loop exit
PB: predicated region body
PF: predicated region fallthrough
CT: control target
= control target key end

     0   :  { %16 = vsyncpa [#allocation3], 0  ;;  %s1634_s17 = smov 0   ;;  %s1923_s0 = inlined_call_operand.vmem [shape: f32[2,5,13], index: 0, kind: input, shape index: {}]   ;;  %s1924_s1 = inlined_call_operand.vmem [shape: f32[2,40,13], index: 1, kind: input, shape index: {}]   ;;  %s1925_s2 = inlined_call_operand.vmem [shape: s32[1,40], index: 2, kind: input, shape index: {}]   ;;  %s1926_s3 = inlined_call_operand.vmem [shape: bf16[13,128], index: 3, kind: input, shape index: {}]   ;;  %s1927_s4 = inlined_call_operand.vmem [shape: f32[1,128], index: 4, kind: input, shape index: {}]   ;;  %s1928_s5 = inlined_call_operand.vmem [shape: bf16[128,512], index: 5, kind: input, shape index: {}]   ;;  %s1929_s6 = inlined_call_operand.vmem [shape: f32[1,512], index: 6, kind: input, shape index: {}]   ;;  %s1930_s7 = inlined_call_operand.hbm [shape: bf16[128,256], index: 7, kind: input, shape index: {}]   ;;  %s1931_s8 = inlined_call_operand.vmem [shape: f32[1,256], index: 8, kind: input, shape index: {}]   ;;  %s1932_s9 = inlined_call_operand.vmem [shape: bf16[128,128], index: 9, kind: input, shape index: {}]   ;;  %s1933_s10 = inlined_call_operand.vmem [shape: f32[1,128], index: 10, kind: input, shape index: {}]   ;;  %s1934_s11 = inlined_call_operand.vmem [shape: f32[2,1,128], index: 11, kind: output, shape index: {}]  }
   0x1 LB: > { %s320_s20 = sshll.u32 %s1930_s7, 4  ;;  %s1189_s21 = sadd.s32 4294967295, %s1567_s17   ;;  %s1567_s17 = sphi %s1634_s17, %s22_s17   ;;  %s321_s20 = int_to_ptr.hbm [resolvable:$true] %s320_s20 }
   0x2   : > { %p1191_p0 = scmp.ge.s32.totalorder %s1567_s17, 1  ;;  %p294_p1 = scmp.lt.s32.totalorder %s1567_s17, 3 }
   0x3   : > { %p1500_p2 = scmp.eq.s32.totalorder %s1189_s21, 0  ;;  %s1569_s22 = smov [#allocation2]  }
   0x4   : > { %p295_p3 = pnand %p1191_p0, %p294_p1  ;;  %s322_s23 = sshll.u32 %s1569_s22, 4  ;;  %s323_s23 = int_to_ptr.vmem [resolvable:$true] %s322_s23 }
   0x5   : > { %s1570_s24 = smov 128   ;;  %s1571_s25 = smov 8  }
   0x6   : > { %p1496_p4 = pneg %p295_p3  ;;  %362 = sbr.rel (%p295_p3) target bundleno = 1040 (0x410), region = 64 }
   0x8   : > { %p1497_p5 = pnand %p1500_p2, %p1496_p4 }
   0xa   : > { %1499 = dma.hbm_to_vmem [thread:$0]  (!%p1497_p5), %s321_s20, 2048, %s323_s23, [#allocation3], %s1570_s24, %s1570_s24, %s1571_s25  }
   0xb   : > { %1562 = dma.done.wait (%p1500_p2), [#allocation3], 2048  }
   0xc   : > { %1564 = vsyncadd (%p1500_p2), [#allocation3], 4294965248  ;;  %p405_p6 = scmp.lt.s32.totalorder %s1189_s21, 1  ;;  %vm443_vm0 = vcmask 1045504   ;;  %vm444_vm1 = vcmask 1046528   ;;  %v1572_v0 = vmov 65535  }
   0xd   : > { %v445_v1 = vsel %vm443_vm0, 4294967295, %v1572_v0  ;;  %v1200_v2 = vld [vmem:[%s1926_s3] sm:$0xf]  ;;  %v1434_v3 = vld [vmem:[%s1926_s3] sm:$0x70]  ;;  %vm439_vm2 = vcmask 105472  }
   0xe   : > { %s1936_s21 = smov (!%p405_p6, %s1189_s21), 1  ;;  %v446_v4 = vsel %vm444_vm1, %v445_v1, 0  ;;  %v1201_v5 = vor.u32 %v1434_v3, %v1200_v2  ;;  %v1320_v12 = vld [vmem:[%s1928_s5 + $0xe0] sm:$0xf]  ;;  %v1465_v13 = vld [vmem:[%s1928_s5 + $0xec] sm:$0xf0] }
   0xf   : > { %s1196_s26 = sshll.u32 %s1936_s21, 3  ;;  %s1491_s27 = smul.u32 40, %s1936_s21  ;;  %v1463_v14 = vld [vmem:[%s1928_s5 + $0xe4] sm:$0xf]  ;;  %v1321_v15 = vor.u32 %v1465_v13, %v1320_v12  ;;  %v1322_v16 = vld [vmem:[%s1928_s5 + $0xf0] sm:$0xf0] }
  0x10   : > { %s408_s30 = scalar_lea.vmem %s1923_s0, %s1196_s26  ;;  %v448_v9 = vand.u32 %v1201_v5, %v446_v4  ;;  %v1304_v17 = vld [vmem:[%s1928_s5 + $0xc0] sm:$0xf]  ;;  %v1461_v18 = vld [vmem:[%s1928_s5 + $0xcc] sm:$0xf0]  ;;  %v1325_v19 = vor.u32 %v1463_v14, %v1322_v16  ;;  %v1459_v20 = vld [vmem:[%s1928_s5 + $0xc4] sm:$0xf] }
  0x11   : > { %s1656_s14 = scalar_lea.vmem %s1924_s1, %s1491_s27  ;;  %v421_v6 = vld [vmem:[%s408_s30] sm:$0x1f]  ;;  %v1306_v21 = vld [vmem:[%s1928_s5 + $0xd0] sm:$0xf0]  ;;  %704 = vmatpush.bf16.msra.mxu2 %v1321_v15  ;;  %v1305_v22 = vor.u32 %v1461_v18, %v1304_v17  ;;  %v1457_v25 = vld [vmem:[%s1928_s5 + $0xac] sm:$0xf0]  ;;  %s416_s30 = scalar_lea.vmem %s1934_s11, %s1936_s21 }
  0x12   : > { %v423_v7 = vld [vmem:[%s1656_s14] sm:$0xff]  ;;  %v424_v8 = vld [vmem:[%s1656_s14 + $0x8] sm:$0xff]  ;;  %v422_v10 = vpack.c.bf16 %v421_v6, %v421_v6  ;;  %457 = vmatpush.bf16.msra.mxu0 %v448_v9  ;;  %480 = vmatpush.bf16.msra.mxu1 %v448_v9  ;;  %v1309_v23 = vor.u32 %v1459_v20, %v1306_v21  ;;  %v1290_v27 = vld [vmem:[%s1928_s5 + $0xb0] sm:$0xf0]  ;;  %vm981_vm3 = vcmask 1043456   ;;  %vm1002_vm4 = vcmask 1041408  }
  0x13   : > { %v428_v11 = vpack.c.bf16 %v424_v8, %v423_v7  ;;  %717 = vmatpush.bf16.msra.mxu3 %v1325_v19  ;;  %v1288_v24 = vld [vmem:[%s1928_s5 + $0xa0] sm:$0xf]  ;;  %v1455_v26 = vld [vmem:[%s1928_s5 + $0xa4] sm:$0xf]  ;;  %v1328_v28 = vld [vmem:[%s1928_s5 + $0xe8] sm:$0xf] }
  0x14   : > { %v1466_v29 = vld [vmem:[%s1928_s5 + $0xf4] sm:$0xf0]  ;;  %v1464_v31 = vld [vmem:[%s1928_s5 + $0xec] sm:$0xf]  ;;  %v1330_v32 = vld [vmem:[%s1928_s5 + $0xf8] sm:$0xf0]  ;;  %v1289_v35 = vor.u32 %v1457_v25, %v1288_v24  ;;  %v1293_v39 = vor.u32 %v1455_v26, %v1290_v27 }
  0x15   : > { %1202 = vmatmul.msk.bf16.vlgmr.msra.gmra.mxu0 %vm439_vm2, %v422_v10  ;;  %1203 = vmatmul.msk.bf16.vlgmr.msra.gmra.mxu1 %vm439_vm2, %v428_v11  ;;  %v1329_v30 = vor.u32 %v1466_v29, %v1328_v28  ;;  %v425_v33 = vld [vmem:[%s1656_s14 + $0x10] sm:$0xff]  ;;  %v426_v34 = vld [vmem:[%s1656_s14 + $0x18] sm:$0xff]  ;;  %v1272_v36 = vld [vmem:[%s1928_s5 + $0x80] sm:$0xf]  ;;  %v1333_v38 = vor.u32 %v1464_v31, %v1330_v32  ;;  %vm1003_vm5 = vcmask 1042432   ;;  %vm961_vm7 = vcmask 323584  }
  0x16   : > { %705 = vmatpush.bf16.msra.mxu2 %v1305_v22  ;;  %v1453_v37 = vld [vmem:[%s1928_s5 + $0x8c] sm:$0xf0]  ;;  %v1312_v40 = vld [vmem:[%s1928_s5 + $0xc8] sm:$0xf]  ;;  %v1462_v41 = vld [vmem:[%s1928_s5 + $0xd4] sm:$0xf0]  ;;  %v429_v53 = vpack.c.bf16 %v426_v34, %v425_v33 }
  0x17   : > { %718 = vmatpush.bf16.msra.mxu3 %v1309_v23  ;;  %730 = vmatpush.bf16.msrb.mxu0 %v1329_v30  ;;  %v1460_v42 = vld [vmem:[%s1928_s5 + $0xcc] sm:$0xf]  ;;  %v1451_v43 = vld [vmem:[%s1928_s5 + $0x84] sm:$0xf]  ;;  %v1274_v44 = vld [vmem:[%s1928_s5 + $0x90] sm:$0xf0]  ;;  %v1313_v45 = vor.u32 %v1462_v41, %v1312_v40  ;;  %v1273_v49 = vor.u32 %v1453_v37, %v1272_v36 }
  0x18   : > { %743 = vmatpush.bf16.msrb.mxu1 %v1333_v38  ;;  %v1314_v46 = vld [vmem:[%s1928_s5 + $0xd8] sm:$0xf0]  ;;  %v1296_v48 = vld [vmem:[%s1928_s5 + $0xa8] sm:$0xf]  ;;  %v1458_v50 = vld [vmem:[%s1928_s5 + $0xb4] sm:$0xf0]  ;;  %v1277_v54 = vor.u32 %v1451_v43, %v1274_v44 }
  0x19   : > { %v1317_v47 = vor.u32 %v1460_v42, %v1314_v46  ;;  %v1456_v51 = vld [vmem:[%s1928_s5 + $0xac] sm:$0xf]  ;;  %v1298_v52 = vld [vmem:[%s1928_s5 + $0xb8] sm:$0xf0]  ;;  %v1256_v55 = vld [vmem:[%s1928_s5 + $0x60] sm:$0xf]  ;;  %v1297_v59 = vor.u32 %v1458_v50, %v1296_v48 }
  0x1a   : > { %706 = vmatpush.bf16.msra.mxu2 %v1289_v35  ;;  %v1449_v56 = vld [vmem:[%s1928_s5 + $0x6c] sm:$0xf0]  ;;  %v1447_v57 = vld [vmem:[%s1928_s5 + $0x64] sm:$0xf]  ;;  %v1258_v58 = vld [vmem:[%s1928_s5 + $0x70] sm:$0xf0]  ;;  %v1301_v60 = vor.u32 %v1456_v51, %v1298_v52 }
  0x1b   : > { %719 = vmatpush.bf16.msra.mxu3 %v1293_v39  ;;  %731 = vmatpush.bf16.msrb.mxu0 %v1313_v45  ;;  %v1280_v61 = vld [vmem:[%s1928_s5 + $0x88] sm:$0xf]  ;;  %v1454_v62 = vld [vmem:[%s1928_s5 + $0x94] sm:$0xf0]  ;;  %v1452_v63 = vld [vmem:[%s1928_s5 + $0x8c] sm:$0xf]  ;;  %v1257_v2 = vor.u32 %v1449_v56, %v1256_v55  ;;  %v1261_v3 = vor.u32 %v1447_v57, %v1258_v58 }
  0x1c   : > { %744 = vmatpush.bf16.msrb.mxu1 %v1317_v47  ;;  %v1282_v1 = vld [vmem:[%s1928_s5 + $0x98] sm:$0xf0]  ;;  %v1240_v4 = vld [vmem:[%s1928_s5 + $0x40] sm:$0xf]  ;;  %v1445_v5 = vld [vmem:[%s1928_s5 + $0x4c] sm:$0xf0]  ;;  %v1281_v8 = vor.u32 %v1454_v62, %v1280_v61 }
  0x1d   : > { %v1443_v6 = vld [vmem:[%s1928_s5 + $0x44] sm:$0xf]  ;;  %v1242_v7 = vld [vmem:[%s1928_s5 + $0x50] sm:$0xf0]  ;;  %v1285_v9 = vor.u32 %v1452_v63, %v1282_v1  ;;  %v1264_v10 = vld [vmem:[%s1928_s5 + $0x68] sm:$0xf]  ;;  %v1241_v14 = vor.u32 %v1445_v5, %v1240_v4 }
  0x1e   : > { %707 = vmatpush.bf16.msra.mxu2 %v1273_v49  ;;  %v1450_v11 = vld [vmem:[%s1928_s5 + $0x74] sm:$0xf0]  ;;  %v1448_v12 = vld [vmem:[%s1928_s5 + $0x6c] sm:$0xf]  ;;  %v1266_v13 = vld [vmem:[%s1928_s5 + $0x78] sm:$0xf0]  ;;  %v1245_v15 = vor.u32 %v1443_v6, %v1242_v7 }
  0x1f   : > { %720 = vmatpush.bf16.msra.mxu3 %v1277_v54  ;;  %732 = vmatpush.bf16.msrb.mxu0 %v1297_v59  ;;  %v1224_v16 = vld [vmem:[%s1928_s5 + $0x20] sm:$0xf]  ;;  %v1441_v17 = vld [vmem:[%s1928_s5 + $0x2c] sm:$0xf0]  ;;  %v1439_v18 = vld [vmem:[%s1928_s5 + $0x24] sm:$0xf]  ;;  %v1265_v20 = vor.u32 %v1450_v11, %v1264_v10  ;;  %v1269_v21 = vor.u32 %v1448_v12, %v1266_v13 }
  0x20   : > { %745 = vmatpush.bf16.msrb.mxu1 %v1301_v60  ;;  %v1226_v19 = vld [vmem:[%s1928_s5 + $0x30] sm:$0xf0]  ;;  %v1248_v22 = vld [vmem:[%s1928_s5 + $0x48] sm:$0xf]  ;;  %v1446_v23 = vld [vmem:[%s1928_s5 + $0x54] sm:$0xf0]  ;;  %v1225_v26 = vor.u32 %v1441_v17, %v1224_v16 }
  0x21   : > { %v1444_v24 = vld [vmem:[%s1928_s5 + $0x4c] sm:$0xf]  ;;  %v1250_v25 = vld [vmem:[%s1928_s5 + $0x58] sm:$0xf0]  ;;  %v427_v27 = vld [vmem:[%s1656_s14 + $0x20] sm:$0xff]  ;;  %v1229_v28 = vor.u32 %v1439_v18, %v1226_v19  ;;  %v1249_v34 = vor.u32 %v1446_v23, %v1248_v22  ;;  %vm923_vm8 = vcmask 36864  }
  0x22   : > { %708 = vmatpush.bf16.msra.mxu2 %v1257_v2  ;;  %v1208_v29 = vld [vmem:[%s1928_s5] sm:$0xf]  ;;  %v1437_v30 = vld [vmem:[%s1928_s5 + $0xc] sm:$0xf0]  ;;  %v1435_v31 = vld [vmem:[%s1928_s5 + $0x4] sm:$0xf]  ;;  %v1253_v35 = vor.u32 %v1444_v24, %v1250_v25  ;;  %v430_v40 = vpack.c.bf16 %v427_v27, %v427_v27 }
  0x23   : > { %721 = vmatpush.bf16.msra.mxu3 %v1261_v3  ;;  %733 = vmatpush.bf16.msrb.mxu0 %v1281_v8  ;;  %v1210_v32 = vld [vmem:[%s1928_s5 + $0x10] sm:$0xf0]  ;;  %v1392_v33 = vld [vmem:[#allocation2 + $0x70] sm:$0xf]  ;;  %v1482_v36 = vld [vmem:[#allocation2 + $0x74] sm:$0xf0]  ;;  %v1209_v39 = vor.u32 %v1437_v30, %v1208_v29 }
  0x24   : > { %746 = vmatpush.bf16.msrb.mxu1 %v1285_v9  ;;  %v1481_v37 = vld [vmem:[#allocation2 + $0x74] sm:$0xf]  ;;  %v1394_v38 = vld [vmem:[#allocation2 + $0x78] sm:$0xf0]  ;;  %v1213_v41 = vor.u32 %v1435_v31, %v1210_v32  ;;  %v1393_v42 = vor.u32 %v1482_v36, %v1392_v33  ;;  %v1384_v44 = vld [vmem:[#allocation2 + $0x60] sm:$0xf] }
  0x25   : > { %1204 = vmatmul.msk.bf16.gmra.mxu1 %vm439_vm2, %v429_v53  ;;  %v1397_v43 = vor.u32 %v1481_v37, %v1394_v38  ;;  %v1480_v45 = vld [vmem:[#allocation2 + $0x64] sm:$0xf0]  ;;  %v1479_v46 = vld [vmem:[#allocation2 + $0x64] sm:$0xf]  ;;  %v1386_v47 = vld [vmem:[#allocation2 + $0x68] sm:$0xf0] }
  0x26   : > { %709 = vmatpush.bf16.msra.mxu2 %v1241_v14  ;;  %v1385_v48 = vor.u32 %v1480_v45, %v1384_v44  ;;  %v1389_v49 = vor.u32 %v1479_v46, %v1386_v47  ;;  %v1232_v50 = vld [vmem:[%s1928_s5 + $0x28] sm:$0xf]  ;;  %v1442_v51 = vld [vmem:[%s1928_s5 + $0x34] sm:$0xf0]  ;;  %v1440_v52 = vld [vmem:[%s1928_s5 + $0x2c] sm:$0xf] }
  0x27   : > { %722 = vmatpush.bf16.msra.mxu3 %v1245_v15  ;;  %734 = vmatpush.bf16.msrb.mxu0 %v1265_v20  ;;  %v1233_v53 = vor.u32 %v1442_v51, %v1232_v50  ;;  %v1234_v54 = vld [vmem:[%s1928_s5 + $0x38] sm:$0xf0]  ;;  %v1376_v55 = vld [vmem:[#allocation2 + $0x50] sm:$0xf]  ;;  %v1478_v56 = vld [vmem:[#allocation2 + $0x54] sm:$0xf0] }
  0x28   : > { %747 = vmatpush.bf16.msrb.mxu1 %v1269_v21  ;;  %v1237_v57 = vor.u32 %v1440_v52, %v1234_v54  ;;  %v1377_v58 = vor.u32 %v1478_v56, %v1376_v55  ;;  %v1477_v59 = vld [vmem:[#allocation2 + $0x54] sm:$0xf]  ;;  %v1378_v60 = vld [vmem:[#allocation2 + $0x58] sm:$0xf0]  ;;  %v1216_v62 = vld [vmem:[%s1928_s5 + $0x8] sm:$0xf] }
  0x29   : > { %v1381_v61 = vor.u32 %v1477_v59, %v1378_v60  ;;  %v1438_v63 = vld [vmem:[%s1928_s5 + $0x14] sm:$0xf0]  ;;  %v1436_v1 = vld [vmem:[%s1928_s5 + $0xc] sm:$0xf]  ;;  %v1218_v3 = vld [vmem:[%s1928_s5 + $0x18] sm:$0xf0] }
  0x2a   : > { %710 = vmatpush.bf16.msra.mxu2 %v1225_v26  ;;  %v1217_v2 = vor.u32 %v1438_v63, %v1216_v62  ;;  %v1368_v4 = vld [vmem:[#allocation2 + $0x40] sm:$0xf]  ;;  %v1476_v5 = vld [vmem:[#allocation2 + $0x44] sm:$0xf0]  ;;  %v1221_v6 = vor.u32 %v1436_v1, %v1218_v3  ;;  %v1475_v8 = vld [vmem:[#allocation2 + $0x44] sm:$0xf] }
  0x2b   : > { %723 = vmatpush.bf16.msra.mxu3 %v1229_v28  ;;  %735 = vmatpush.bf16.msrb.mxu0 %v1249_v34  ;;  %v1369_v7 = vor.u32 %v1476_v5, %v1368_v4  ;;  %v1370_v9 = vld [vmem:[#allocation2 + $0x48] sm:$0xf0]  ;;  %v1360_v11 = vld [vmem:[#allocation2 + $0x30] sm:$0xf]  ;;  %v1474_v12 = vld [vmem:[#allocation2 + $0x34] sm:$0xf0] }
  0x2c   : > { %748 = vmatpush.bf16.msrb.mxu1 %v1253_v35  ;;  %v1373_v10 = vor.u32 %v1475_v8, %v1370_v9  ;;  %v1473_v13 = vld [vmem:[#allocation2 + $0x34] sm:$0xf]  ;;  %v1361_v14 = vor.u32 %v1474_v12, %v1360_v11  ;;  %v1362_v15 = vld [vmem:[#allocation2 + $0x38] sm:$0xf0]  ;;  %v1352_v17 = vld [vmem:[#allocation2 + $0x20] sm:$0xf] }
  0x2d   : > { %v1365_v16 = vor.u32 %v1473_v13, %v1362_v15  ;;  %v1472_v18 = vld [vmem:[#allocation2 + $0x24] sm:$0xf0]  ;;  %v1471_v19 = vld [vmem:[#allocation2 + $0x24] sm:$0xf]  ;;  %v1354_v21 = vld [vmem:[#allocation2 + $0x28] sm:$0xf0] }
  0x2e   : > { %711 = vmatpush.bf16.msra.mxu2 %v1209_v39  ;;  %v1353_v20 = vor.u32 %v1472_v18, %v1352_v17  ;;  %v1357_v22 = vor.u32 %v1471_v19, %v1354_v21  ;;  %v1344_v23 = vld [vmem:[#allocation2 + $0x10] sm:$0xf]  ;;  %v1470_v24 = vld [vmem:[#allocation2 + $0x14] sm:$0xf0]  ;;  %v1469_v25 = vld [vmem:[#allocation2 + $0x14] sm:$0xf] }
  0x2f   : > { %724 = vmatpush.bf16.msra.mxu3 %v1213_v41  ;;  %736 = vmatpush.bf16.msrb.mxu0 %v1233_v53  ;;  %v1345_v26 = vor.u32 %v1470_v24, %v1344_v23  ;;  %v1346_v27 = vld [vmem:[#allocation2 + $0x18] sm:$0xf0]  ;;  %v1336_v29 = vld [vmem:[#allocation2] sm:$0xf]  ;;  %v1468_v30 = vld [vmem:[#allocation2 + $0x4] sm:$0xf0] }
  0x30   : > { %749 = vmatpush.bf16.msrb.mxu1 %v1237_v57  ;;  %v1349_v28 = vor.u32 %v1469_v25, %v1346_v27  ;;  %v1467_v31 = vld [vmem:[#allocation2 + $0x4] sm:$0xf]  ;;  %v1337_v32 = vor.u32 %v1468_v30, %v1336_v29  ;;  %v1338_v33 = vld [vmem:[#allocation2 + $0x8] sm:$0xf0]  ;;  %v1515_v35 = vld [vmem:[%s1927_s4] ss:$0 sm:$0xff] }
  0x31   : > { %v1341_v34 = vor.u32 %v1467_v31, %v1338_v33  ;;  %v1873_v62 = vld [vmem:[%s1929_s6] sm:$0xf]  ;;  %vm977_vm9 = vcmask 326656   ;;  %vm998_vm10 = vcmask 39936   ;;  %vm1022_vm11 = vcmask 1044480  }
  0x32   : > { %861 = vmatpush.bf16.msrb.mxu2 %v1393_v42  ;;  %v537_v63 = vperm.slane %v1873_v62, 1  ;;  %v536_v4 = vperm.slane %v1873_v62, 0  ;;  %v538_v25 = vperm.slane %v1873_v62, 2 }
  0x33   : > { %884 = vmatpush.bf16.msrb.mxu3 %v1397_v43  ;;  %737 = vmatpush.bf16.msrb.mxu0 %v1217_v2 }
  0x34   : > { %750 = vmatpush.bf16.msrb.mxu1 %v1221_v6 }
  0x35   : > { %1205 = vmatmul.msk.bf16.gmra.mxu1 %vm439_vm2, %v430_v40 }
  0x36   : > { %862 = vmatpush.bf16.msrb.mxu2 %v1385_v48 }
  0x37   : > { %885 = vmatpush.bf16.msrb.mxu3 %v1389_v49 }
  0x3a   : > { %863 = vmatpush.bf16.msrb.mxu2 %v1377_v58 }
  0x3b   : > { %886 = vmatpush.bf16.msrb.mxu3 %v1381_v61 }
  0x3e   : > { %864 = vmatpush.bf16.msrb.mxu2 %v1369_v7 }
  0x3f   : > { %887 = vmatpush.bf16.msrb.mxu3 %v1373_v10 }
  0x42   : > { %865 = vmatpush.bf16.msrb.mxu2 %v1361_v14 }
  0x43   : > { %888 = vmatpush.bf16.msrb.mxu3 %v1365_v16 }
  0x46   : > { %866 = vmatpush.bf16.msrb.mxu2 %v1353_v20  ;;  %v775_v20 = vld [vmem:[%s1931_s8] sm:$0x3] }
  0x47   : > { %889 = vmatpush.bf16.msrb.mxu3 %v1357_v22  ;;  %v777_v21 = vperm.slane %v775_v20, 0  ;;  %v778_v22 = vperm.slane %v775_v20, 1  ;;  %v1489_v20 = vld [vmem:[%s1932_s9 + $0x30] sm:$0xff] }
  0x4a   : > { %867 = vmatpush.bf16.msrb.mxu2 %v1345_v26 }
  0x4b   : > { %890 = vmatpush.bf16.msrb.mxu3 %v1349_v28 }
  0x4e   : > { %868 = vmatpush.bf16.msrb.mxu2 %v1337_v32 }
  0x4f   : > { %891 = vmatpush.bf16.msrb.mxu3 %v1341_v34  ;;  %v1004_v34 = vsel %vm1002_vm4, 4294967295, %v1572_v0  ;;  %v539_v0 = vperm.slane %v1873_v62, 3 }
  0x92   : > { %v459_v36 = vpop.f32.mrf.mxu0  ;;  %v482_v37 = vpop.f32.mrf.mxu1 }
  0x93   : > { %v460_v38 = vadd.f32 %v1515_v35, %v459_v36  ;;  %v483_v43 = vadd.f32 %v1515_v35, %v482_v37 }
  0x95   : > { %v463_v39 = vmax.f32 %v460_v38, 0.0  ;;  %v496_v46 = vmax.f32 %v483_v43, 0.0 }
  0x97   : > { %v501_v40 = vpack.c.bf16 %v463_v39, %v463_v39 }
  0x99   : > { %712 = vmatmul.bf16.vlgmr.msra.gmra.mxu2 %v501_v40  ;;  %725 = vmatmul.bf16.vlgmr.msra.gmra.mxu3 %v501_v40 }
  0x9a   : > { %738 = vmatmul.bf16.vlgmr.msrb.gmra.mxu0 %v501_v40  ;;  %751 = vmatmul.bf16.vlgmr.msrb.gmra.mxu1 %v501_v40  ;;  %v461_v41 = vpop.f32.mrf.mxu0  ;;  %v484_v42 = vpop.f32.mrf.mxu1 }
  0x9b   : > { %v485_v44 = vadd.f32 %v1515_v35, %v484_v42  ;;  %v1005_v42 = vsel %vm1003_vm5, %v1004_v34, 0 }
  0x9d   : > { %v497_v47 = vmax.f32 %v485_v44, 0.0 }
  0x9f   : > { %v756_v48 = vpack.c.bf16 %v497_v47, %v496_v46 }
  0xa2   : > { %v487_v45 = vpop.f32.mrf.mxu1 }
  0xa3   : > { %v488_v50 = vadd.f32 %v1515_v35, %v487_v45 }
  0xa5   : > { %v498_v53 = vmax.f32 %v488_v50, 0.0 }
  0xa9   : > { %869 = vmatmul.bf16.vlgmr.msrb.gmra.mxu2 %v756_v48  ;;  %892 = vmatmul.bf16.vlgmr.msrb.gmra.mxu3 %v756_v48 }
  0xaa   : > { %v489_v49 = vpop.f32.mrf.mxu1 }
  0xab   : > { %v490_v51 = vadd.f32 %v1515_v35, %v489_v49 }
  0xad   : > { %v499_v54 = vmax.f32 %v490_v51, 0.0 }
  0xaf   : > { %v757_v55 = vpack.c.bf16 %v499_v54, %v498_v53  ;;  %v955_v54 = vlaneseq }
  0xb2   : > { %v492_v52 = vpop.f32.mrf.mxu1 }
  0xb3   : > { %v493_v57 = vadd.f32 %v1515_v35, %v492_v52 }
  0xb5   : > { %v500_v58 = vmax.f32 %v493_v57, 0.0 }
  0xb7   : > { %v758_v59 = vpack.c.bf16 %v500_v58, %v500_v58 }
  0xb9   : > { %874 = vmatmul.bf16.gmra.mxu2 %v757_v55  ;;  %897 = vmatmul.bf16.gmra.mxu3 %v757_v55  ;;  %v956_v55 = vshrl.u32 %v955_v54, 7 }
  0xba   : > { %v494_v56 = vpop.f32.mrf.mxu1 }
  0xbb   : > { %v1516_v56 = vld [vmem:[%s1925_s2] ss:$0 sm:$0xff] }
  0xbc   : > { %vm959_vm6 = vcmp.eq.s32.totalorder %v1516_v56, %v956_v55 }
  0xc9   : > { %879 = vmatmul.bf16.gmra.mxu2 %v758_v59  ;;  %902 = vmatmul.bf16.gmra.mxu3 %v758_v59 }
 0x117   : > { %v739_v60 = vpop.f32.mrf.mxu0  ;;  %v1868_v61 = vpop.f32.mrf.mxu1 }
 0x118   : > { %v740_v31 = vadd.f32 %v739_v60, %v538_v25  ;;  %v753_v50 = vadd.f32 %v1868_v61, %v539_v0  ;;  %v1484_v25 = vld [vmem:[%s1932_s9 + $0x8] sm:$0xff] }
 0x11a   : > { %v936_v40 = vpack.c.bf16 %v740_v31, %v740_v31  ;;  %v937_v51 = vpack.c.bf16 %v753_v50, %v753_v50 }
 0x11c   : > { %v713_v1 = vpop.f32.mrf.mxu2  ;;  %v726_v2 = vpop.f32.mrf.mxu3  ;;  %v1007_v46 = vand.u32 %v1005_v42, %v936_v40 }
 0x11d   : > { %v727_v3 = vadd.f32 %v726_v2, %v537_v63  ;;  %v714_v8 = vadd.f32 %v713_v1, %v536_v4 }
 0x11f   : > { %v908_v5 = vpack.c.bf16 %v727_v3, %v727_v3  ;;  %v741_v6 = vpop.f32.mrf.mxu0  ;;  %v754_v7 = vpop.f32.mrf.mxu1  ;;  %v907_v11 = vpack.c.bf16 %v714_v8, %v714_v8 }
 0x121   : > { %916 = vmatpush.bf16.xpose.msra.mxu1 %v908_v5 }
 0x124   : > { %v715_v9 = vpop.f32.mrf.mxu2  ;;  %v728_v10 = vpop.f32.mrf.mxu3 }
 0x128   : > { %917 = vmatmul.bf16.vlgmr.msra.gmra.mxu1 %v907_v11 }
 0x12c   : > { %v870_v12 = vpop.f32.mrf.mxu2  ;;  %v893_v13 = vpop.f32.mrf.mxu3 }
 0x12d   : > { %v894_v43 = vadd.f32 %v893_v13, %v778_v22  ;;  %v871_v48 = vadd.f32 %v870_v12, %v777_v21 }
 0x134   : > { %v872_v14 = vpop.f32.mrf.mxu2  ;;  %v895_v15 = vpop.f32.mrf.mxu3 }
 0x135   : > { %v896_v36 = vadd.f32 %v895_v15, %v778_v22  ;;  %v873_v47 = vadd.f32 %v872_v14, %v777_v21 }
 0x137   : > { %v974_v45 = vpack.c.bf16 %v896_v36, %v894_v43  ;;  %v938_v49 = vpack.c.bf16 %v873_v47, %v871_v48  ;;  %v1055_v48 = vld [vmem:[%s1933_s10] sm:$0x1] }
 0x13c   : > { %v875_v16 = vpop.f32.mrf.mxu2  ;;  %v898_v17 = vpop.f32.mrf.mxu3 }
 0x13d   : > { %v899_v33 = vadd.f32 %v898_v17, %v778_v22  ;;  %v876_v41 = vadd.f32 %v875_v16, %v777_v21 }
 0x144   : > { %v877_v18 = vpop.f32.mrf.mxu2  ;;  %v900_v19 = vpop.f32.mrf.mxu3 }
 0x145   : > { %v901_v30 = vadd.f32 %v900_v19, %v778_v22  ;;  %v878_v35 = vadd.f32 %v877_v18, %v777_v21  ;;  %v1490_v19 = vld [vmem:[%s1932_s9 + $0x38] sm:$0xff] }
 0x147   : > { %v975_v37 = vpack.c.bf16 %v901_v30, %v899_v33  ;;  %v939_v44 = vpack.c.bf16 %v878_v35, %v876_v41 }
 0x14c   : > { %v880_v23 = vpop.f32.mrf.mxu2  ;;  %v903_v24 = vpop.f32.mrf.mxu3 }
 0x14d   : > { %v881_v26 = vadd.f32 %v880_v23, %v777_v21  ;;  %v904_v27 = vadd.f32 %v903_v24, %v778_v22  ;;  %v1488_v21 = vld [vmem:[%s1932_s9 + $0x28] sm:$0xff]  ;;  %v1487_v22 = vld [vmem:[%s1932_s9 + $0x20] sm:$0xff]  ;;  %v1486_v23 = vld [vmem:[%s1932_s9 + $0x18] sm:$0xff] }
 0x14e   : > { %v1485_v24 = vld [vmem:[%s1932_s9 + $0x10] sm:$0xff] }
 0x14f   : > { %v940_v28 = vpack.c.bf16 %v881_v26, %v881_v26  ;;  %v976_v29 = vpack.c.bf16 %v904_v27, %v904_v27  ;;  %v1483_v26 = vld [vmem:[%s1932_s9] sm:$0xff] }
 0x151   : > { %v983_v32 = vsel %vm981_vm3, %v976_v29, 0  ;;  %946 = vmatpush.bf16.xpose.msra.mxu0 %v940_v28  ;;  %v1573_v28 = vmov 5.0  }
 0x152   : > { %990 = vmatpush.bf16.msrb.mxu1 %v983_v32 }
 0x154   : > { %v882_v38 = vpop.f32.mrf.mxu2  ;;  %v905_v39 = vpop.f32.mrf.mxu3 }
 0x156   : > { %991 = vmatpush.bf16.msrb.mxu1 %v975_v37 }
 0x159   : > { %947 = vmatpush.bf16.xpose.msra.mxu0 %v939_v44 }
 0x15a   : > { %992 = vmatpush.bf16.msrb.mxu1 %v974_v45 }
 0x15e   : > { %1016 = vmatpush.bf16.msra.mxu1 %v1007_v46 }
 0x161   : > { %948 = vmatpush.bf16.xpose.msra.mxu0 %v938_v49 }
 0x168   : > { %949 = vmatmul.bf16.vlgmr.msra.gmra.mxu0 %v937_v51 }
 0x169   : > { %1104 = vmatpush.bf16.msrb.mxu0 %v1490_v19 }
 0x16d   : > { %1105 = vmatpush.bf16.msrb.mxu0 %v1489_v20 }
 0x171   : > { %1106 = vmatpush.bf16.msrb.mxu0 %v1488_v21 }
 0x175   : > { %1107 = vmatpush.bf16.msrb.mxu0 %v1487_v22 }
 0x179   : > { %1108 = vmatpush.bf16.msrb.mxu0 %v1486_v23 }
 0x17d   : > { %1109 = vmatpush.bf16.msrb.mxu0 %v1485_v24 }
 0x181   : > { %1110 = vmatpush.bf16.msrb.mxu0 %v1484_v25 }
 0x185   : > { %1111 = vmatpush.bf16.msrb.mxu0 %v1483_v26 }
 0x1a5   : > { %v918_v52 = vpop.f32.mrf.mxu1 }
 0x1a6   : > { %v922_v62 = vmul.f32 0.088388346, %v918_v52 }
 0x1a8   : > { %v924_v63 = vsel %vm923_vm8, %v922_v62, -inf }
 0x1ad   : > { %v920_v53 = vpop.f32.mrf.mxu1 }
 0x1e5   : > { %v950_v57 = vpop.f32.mrf.mxu0 }
 0x1e6   : > { %v954_v58 = vmul.f32 0.088388346, %v950_v57 }
 0x1e8   : > { %v960_v59 = vsel %vm959_vm6, %v954_v58, -1e+30 }
 0x1e9   : > { %v962_v60 = vsel %vm961_vm7, %v960_v59, -inf }
 0x1ea   : > { %963 = vmax.xlane.f32.xlu0 %v962_v60 }
 0x1ed   : > { %v952_v61 = vpop.f32.mrf.mxu0 }
 0x1f2   : > { %925 = vmax.xlane.f32.xlu0 %v924_v63 }
 0x25d   : > { %v964_v1 = vpop.xlane.xlu0 %963 }
 0x25e   : > { %v965_v2 = vsub.f32 %v960_v59, %v964_v1 }
 0x260   : > { %v966_v3 = vmul.f32 1.442695, %v965_v2 }
 0x262   : > { %1517 = vpow2.f32 %v966_v3 }
 0x265   : > { %v926_v4 = vpop.xlane.xlu0 %925 }
 0x266   : > { %v927_v5 = vsub.f32 %v922_v62, %v926_v4 }
 0x268   : > { %v1518_v6 = vpop.eup %1517  ;;  %v928_v7 = vmul.f32 1.442695, %v927_v5 }
 0x269   : > { %v968_v8 = vsel %vm961_vm7, %v1518_v6, 0.0 }
 0x26a   : > { %1519 = vpow2.f32 %v928_v7  ;;  %969 = vadd.xlane.f32.xlu1 %v968_v8 }
 0x270   : > { %v1520_v9 = vpop.eup %1519 }
 0x271   : > { %v930_v10 = vsel %vm923_vm8, %v1520_v9, 0.0 }
 0x272   : > { %931 = vadd.xlane.f32.xlu1 %v930_v10 }
 0x2dd   : > { %v970_v11 = vpop.xlane.xlu1 %969 }
 0x2de   : > { %1521 = vrcp.f32 %v970_v11 }
 0x2e4   : > { %v1522_v12 = vpop.eup %1521 }
 0x2e5   : > { %v972_v13 = vmul.f32 %v1522_v12, %v1518_v6  ;;  %v932_v15 = vpop.xlane.xlu1 %931 }
 0x2e6   : > { %1523 = vrcp.f32 %v932_v15 }
 0x2e7   : > { %v973_v14 = vpack.c.bf16 %v972_v13, %v972_v13  ;;  %1525 = vrcp.f32 %v1573_v28 }
 0x2e9   : > { %1398 = vmatmul.msk.bf16.vlgmr.msrb.gmra.mxu1 %vm977_vm9, %v973_v14 }
 0x2ec   : > { %v1524_v16 = vpop.eup %1523 }
 0x2ed   : > { %v934_v17 = vmul.f32 %v1524_v16, %v1520_v9  ;;  %v1526_v30 = vpop.eup %1525 }
 0x2ee   : > { %v1031_v31 = vmul.f32 5.0, %v1526_v30  ;;  %vm1035_vm12 = vweird.f32 %v1526_v30 }
 0x2ef   : > { %v935_v18 = vpack.c.bf16 %v934_v17, %v934_v17 }
 0x2f0   : > { %v1032_v34 = vsub.f32 1.0, %v1031_v31 }
 0x2f2   : > { %v1033_v37 = vmul.f32 %v1526_v30, %v1032_v34 }
 0x2f4   : > { %v1034_v41 = vadd.f32 %v1526_v30, %v1033_v37 }
 0x2f6   : > { %v1036_v44 = vsel %vm1035_vm12, %v1526_v30, %v1034_v41 }
 0x2f9   : > { %1399 = vmatmul.msk.bf16.vlgmr.msra.gmra.mxu1 %vm998_vm10, %v935_v18 }
 0x366   : > { %v994_v27 = vpop.f32.mrf.mxu1 }
 0x36e   : > { %v996_v29 = vpop.f32.mrf.mxu1 }
 0x376   : > { %v1018_v32 = vpop.f32.mrf.mxu1 }
 0x377   : > { %v1019_v33 = vadd.f32 %v1018_v32, %v994_v27 }
 0x379   : > { %v1023_v35 = vsel %vm1022_vm11, %v1019_v33, 0.0 }
 0x37a   : > { %v1024_v36 = vrot.slane %v1023_v35, 4 }
 0x37c   : > { %v1025_v38 = vadd.f32 %v1024_v36, %v1023_v35 }
 0x37e   : > { %v1026_v39 = vrot.slane %v1025_v38, 2  ;;  %v1020_v40 = vpop.f32.mrf.mxu1 }
 0x380   : > { %v1027_v42 = vadd.f32 %v1026_v39, %v1025_v38 }
 0x382   : > { %v1028_v43 = vrot.slane %v1027_v42, 1 }
 0x384   : > { %v1029_v45 = vadd.f32 %v1028_v43, %v1027_v42 }
 0x386   : > { %v1037_v46 = vmul.f32 %v1036_v44, %v1029_v45 }
 0x388   : > { %v1038_v47 = vpack.c.bf16 %v1037_v46, %v1037_v46 }
 0x38a   : > { %1112 = vmatmul.bf16.vlgmr.msrb.gmra.mxu0 %v1038_v47 }
 0x407   : > { %v1113_v0 = vpop.f32.mrf.mxu0 }
 0x408   : > { %v1114_v49 = vadd.f32 %v1113_v0, %v1055_v48 }
 0x40a   : > { %1117 = vst [vmem:[%s416_s30] sm:$0x1] %v1114_v49 }
 0x40f   : > { %v1115_v50 = vpop.f32.mrf.mxu0 }
 0x410 PF: > { %s22_s17 = sadd.s32 1, %s1567_s17  }
 0x411   : > { %p19_p7 = scmp.ge.s32.totalorder %s22_s17, 4  }
 0x413   :  { %21 = sbr.rel (!%p19_p7) target bundleno = 1 (0x1), region = 102 }
 0x418   :  { %1135 = vsyncpa [#allocation3], 1 }
 0x419   :  { %1137 = vsyncpa [#allocation3 + $0x1], 1 }

</bundles_post_ra>
